<compile_context>
chip_gen: v7x
topology: tpu7x:2x2x1
jax: 0.10.0
libtpu: 0.0.40
codegen_flags: <defaults>
</compile_context>

<pallas_src>
import jax
import jax.numpy as jnp
from jax.experimental import pallas as pl
from jax.experimental.pallas import tpu as pltpu

_EXAM_WEIGHTS = (0.0736196319, 0.2346625767, 0.0782208589, 0.06257668712,
                 0.1042944785, 0.06257668712, 0.1042944785, 0.1877300613,
                 0.09202453988)
_NUM_TARGETS = len(_EXAM_WEIGHTS)
_TOTAL_W = float(sum(_EXAM_WEIGHTS))
# Fold the BCE negation and the final 1/sum(w) normalization into the weights
# at Python time: loss = sum((y*log(p) + (1-y)*log(1-p)) * (-w_i / total_w)).
_W_SCALED = tuple(-w / _TOTAL_W for w in _EXAM_WEIGHTS)

# Fall back to wrapper-side row-0 slicing only for pathological batch sizes
# (keeps the untiled full-array VMEM path safe on v7x's 64 MiB VMEM).
_FULL_ARRAY_VMEM_LIMIT_BYTES = 4 << 20  # 4 MiB per input is far below any limit


def _rsna_loss_kernel(pred_ref, label_ref, out_ref):
    # Only batch row 0 contributes (torch: torch.sum(..., 1)[0]).
    p = pred_ref[0:1, :].astype(jnp.float32)     # (1, 9)
    y = label_ref[0:1, :].astype(jnp.float32)    # (1, 9)

    # Build the scaled weight row from scalar literals.  A captured jnp array
    # constant is rejected by pallas_call, so construct it with lane-wise
    # selects (a handful of VPU ops; constant-foldable, no DMA, no operand).
    lane = jax.lax.broadcasted_iota(jnp.int32, (1, _NUM_TARGETS), 1)
    w = jnp.zeros((1, _NUM_TARGETS), jnp.float32)
    for i, wi in enumerate(_W_SCALED):
        w = jnp.where(lane == i, jnp.float32(wi), w)

    # torch.nn.BCELoss clamps each log term at -100 (handles log(0) -> -inf
    # and avoids 0 * -inf NaNs).  Keep the two-term form so arbitrary
    # (non-{0,1}) labels match torch exactly.
    log_p = jnp.maximum(jnp.log(p), -100.0)
    log_1mp = jnp.maximum(jnp.log(1.0 - p), -100.0)
    inner = y * log_p + (1.0 - y) * log_1mp      # == -bce, negation is in w

    # (1, 1) output; weights already carry -1/sum(w).
    out_ref[...] = jnp.sum(inner * w, axis=1, keepdims=True)


def rsna_loss(predicted, label):
    """predicted, label: (batch, 9) arrays. Returns scalar float32 loss."""
    assert predicted.shape == label.shape
    assert predicted.shape[-1] == _NUM_TARGETS

    # Pass the FULL arrays (no wrapper-side slice -> no extra HBM copy in
    # front of the custom call); the kernel reads only row 0.  Guard the
    # untiled-VMEM path for absurdly large batches (v7x has 64 MiB VMEM).
    per_input_bytes = predicted.shape[0] * _NUM_TARGETS * predicted.dtype.itemsize
    if per_input_bytes > _FULL_ARRAY_VMEM_LIMIT_BYTES:
        predicted = predicted[0:1, :]
        label = label[0:1, :]

    out = pl.pallas_call(
        _rsna_loss_kernel,
        out_shape=jax.ShapeDtypeStruct((1, 1), jnp.float32),
        in_specs=[
            pl.BlockSpec(memory_space=pltpu.MemorySpace.VMEM),
            pl.BlockSpec(memory_space=pltpu.MemorySpace.VMEM),
        ],
        out_specs=pl.BlockSpec(memory_space=pltpu.MemorySpace.VMEM),
        # Tiny op: tell the XLA scheduler not to treat it as a big opaque call.
        cost_estimate=pl.CostEstimate(
            flops=8 * _NUM_TARGETS,
            transcendentals=2 * _NUM_TARGETS,
            bytes_accessed=2 * _NUM_TARGETS * 4 + 4,
        ),
    )(predicted, label)
    return out[0, 0]


def _reference(predicted, label):
    # Pure-JAX reference mirroring the PyTorch code exactly.
    p = predicted.astype(jnp.float32)
    y = label.astype(jnp.float32)
    w = jnp.asarray(_EXAM_WEIGHTS, dtype=jnp.float32).reshape(1, -1)
    bce = -(y * jnp.maximum(jnp.log(p), -100.0)
            + (1.0 - y) * jnp.maximum(jnp.log(1.0 - p), -100.0))
    exam = jnp.sum(bce * w, axis=1)[0]
    return exam / jnp.sum(w)


if __name__ == "__main__":
    key = jax.random.PRNGKey(0)
    k1, k2 = jax.random.split(key)
    batch, n_targets = 2, _NUM_TARGETS

    # predictions must be probabilities in (0, 1); labels are {0, 1} floats.
    predicted = jax.nn.sigmoid(jax.random.normal(k1, (batch, n_targets), jnp.float32))
    label = jax.random.bernoulli(k2, 0.5, (batch, n_targets)).astype(jnp.float32)

    out = rsna_loss(predicted, label)
    out = jax.block_until_ready(out)

    ref = _reference(predicted, label)
    assert jnp.allclose(out, ref, rtol=1e-5, atol=1e-6), (out, ref)

    print("KERNEL_OK")
</pallas_src>

<mosaic_0001>
module attributes {stable_mosaic.version = 11 : i64} {
  func.func @_rsna_loss_kernel(%arg0: memref<2x9xf32, #tpu.memory_space<vmem>>, %arg1: memref<2x9xf32, #tpu.memory_space<vmem>>, %arg2: memref<1x1xf32, #tpu.memory_space<vmem>>) attributes {dimension_semantics = [], scalar_prefetch = 0 : i64, scratch_operands = 0 : i64, tpu.core_type = #tpu.core_type<tc>} {
    %c0 = arith.constant 0 : index
    %c0_0 = arith.constant 0 : index
    %0 = vector.load %arg0[%c0, %c0_0] : memref<2x9xf32, #tpu.memory_space<vmem>>, vector<1x9xf32>
    %c0_1 = arith.constant 0 : index
    %c0_2 = arith.constant 0 : index
    %1 = vector.load %arg1[%c0_1, %c0_2] : memref<2x9xf32, #tpu.memory_space<vmem>>, vector<1x9xf32>
    %2 = tpu.iota {dimensions = array<i32: 1>} : vector<1x9xi32>
    %cst = arith.constant 0.000000e+00 : f32
    %3 = vector.broadcast %cst : f32 to vector<1x9xf32>
    %c0_i32 = arith.constant 0 : i32
    %4 = vector.broadcast %c0_i32 : i32 to vector<1x9xi32>
    %5 = arith.cmpi eq, %2, %4 : vector<1x9xi32>
    %cst_3 = arith.constant -0.0736196339 : f32
    %6 = vector.broadcast %cst_3 : f32 to vector<1x9xf32>
    %7 = arith.select %5, %6, %3 : vector<1x9xi1>, vector<1x9xf32>
    %c1_i32 = arith.constant 1 : i32
    %8 = vector.broadcast %c1_i32 : i32 to vector<1x9xi32>
    %9 = arith.cmpi eq, %2, %8 : vector<1x9xi32>
    %cst_4 = arith.constant -0.234662578 : f32
    %10 = vector.broadcast %cst_4 : f32 to vector<1x9xf32>
    %11 = arith.select %9, %10, %7 : vector<1x9xi1>, vector<1x9xf32>
    %c2_i32 = arith.constant 2 : i32
    %12 = vector.broadcast %c2_i32 : i32 to vector<1x9xi32>
    %13 = arith.cmpi eq, %2, %12 : vector<1x9xi32>
    %cst_5 = arith.constant -0.0782208592 : f32
    %14 = vector.broadcast %cst_5 : f32 to vector<1x9xf32>
    %15 = arith.select %13, %14, %11 : vector<1x9xi1>, vector<1x9xf32>
    %c3_i32 = arith.constant 3 : i32
    %16 = vector.broadcast %c3_i32 : i32 to vector<1x9xi32>
    %17 = arith.cmpi eq, %2, %16 : vector<1x9xi32>
    %cst_6 = arith.constant -0.0625766888 : f32
    %18 = vector.broadcast %cst_6 : f32 to vector<1x9xf32>
    %19 = arith.select %17, %18, %15 : vector<1x9xi1>, vector<1x9xf32>
    %c4_i32 = arith.constant 4 : i32
    %20 = vector.broadcast %c4_i32 : i32 to vector<1x9xi32>
    %21 = arith.cmpi eq, %2, %20 : vector<1x9xi32>
    %cst_7 = arith.constant -0.104294479 : f32
    %22 = vector.broadcast %cst_7 : f32 to vector<1x9xf32>
    %23 = arith.select %21, %22, %19 : vector<1x9xi1>, vector<1x9xf32>
    %c5_i32 = arith.constant 5 : i32
    %24 = vector.broadcast %c5_i32 : i32 to vector<1x9xi32>
    %25 = arith.cmpi eq, %2, %24 : vector<1x9xi32>
    %cst_8 = arith.constant -0.0625766888 : f32
    %26 = vector.broadcast %cst_8 : f32 to vector<1x9xf32>
    %27 = arith.select %25, %26, %23 : vector<1x9xi1>, vector<1x9xf32>
    %c6_i32 = arith.constant 6 : i32
    %28 = vector.broadcast %c6_i32 : i32 to vector<1x9xi32>
    %29 = arith.cmpi eq, %2, %28 : vector<1x9xi32>
    %cst_9 = arith.constant -0.104294479 : f32
    %30 = vector.broadcast %cst_9 : f32 to vector<1x9xf32>
    %31 = arith.select %29, %30, %27 : vector<1x9xi1>, vector<1x9xf32>
    %c7_i32 = arith.constant 7 : i32
    %32 = vector.broadcast %c7_i32 : i32 to vector<1x9xi32>
    %33 = arith.cmpi eq, %2, %32 : vector<1x9xi32>
    %cst_10 = arith.constant -0.187730059 : f32
    %34 = vector.broadcast %cst_10 : f32 to vector<1x9xf32>
    %35 = arith.select %33, %34, %31 : vector<1x9xi1>, vector<1x9xf32>
    %c8_i32 = arith.constant 8 : i32
    %36 = vector.broadcast %c8_i32 : i32 to vector<1x9xi32>
    %37 = arith.cmpi eq, %2, %36 : vector<1x9xi32>
    %cst_11 = arith.constant -0.0920245423 : f32
    %38 = vector.broadcast %cst_11 : f32 to vector<1x9xf32>
    %39 = arith.select %37, %38, %35 : vector<1x9xi1>, vector<1x9xf32>
    %40 = math.log %0 : vector<1x9xf32>
    %cst_12 = arith.constant -1.000000e+02 : f32
    %41 = vector.broadcast %cst_12 : f32 to vector<1x9xf32>
    %42 = arith.maximumf %40, %41 : vector<1x9xf32>
    %cst_13 = arith.constant 1.000000e+00 : f32
    %43 = vector.broadcast %cst_13 : f32 to vector<1x9xf32>
    %44 = arith.subf %43, %0 : vector<1x9xf32>
    %45 = math.log %44 : vector<1x9xf32>
    %cst_14 = arith.constant -1.000000e+02 : f32
    %46 = vector.broadcast %cst_14 : f32 to vector<1x9xf32>
    %47 = arith.maximumf %45, %46 : vector<1x9xf32>
    %48 = arith.mulf %1, %42 : vector<1x9xf32>
    %cst_15 = arith.constant 1.000000e+00 : f32
    %49 = vector.broadcast %cst_15 : f32 to vector<1x9xf32>
    %50 = arith.subf %49, %1 : vector<1x9xf32>
    %51 = arith.mulf %50, %47 : vector<1x9xf32>
    %52 = arith.addf %48, %51 : vector<1x9xf32>
    %53 = arith.mulf %52, %39 : vector<1x9xf32>
    %cst_16 = arith.constant dense<0.000000e+00> : vector<1xf32>
    %54 = vector.multi_reduction <add>, %53, %cst_16 [1] : vector<1x9xf32> to vector<1xf32>
    %55 = vector.shape_cast %54 : vector<1xf32> to vector<1x1xf32>
    %c0_17 = arith.constant 0 : index
    %c0_18 = arith.constant 0 : index
    %56 = vector.load %arg2[%c0_17, %c0_18] : memref<1x1xf32, #tpu.memory_space<vmem>>, vector<1x1xf32>
    tpu.vector_store %arg2[%c0_17, %c0_18], %55 {strides = array<i32>} : memref<1x1xf32, #tpu.memory_space<vmem>>, vector<1x1xf32>,
    return
  }
}

</mosaic_0001>

<bundles_post_ra>
// kernel: tpu_custom_call.1
= control target key start
LH: loop header
LB: loop body
LE: loop exit
PB: predicated region body
PF: predicated region fallthrough
CT: control target
= control target key end

     0   :  { %7 = vsyncpa [#allocation3], 0  ;;  %s179_s0 = inlined_call_operand.hbm [shape: f32[2,9], index: 0, kind: input, shape index: {}]   ;;  %s180_s1 = inlined_call_operand.vmem [shape: f32[2,9], index: 1, kind: input, shape index: {}]   ;;  %s181_s2 = inlined_call_operand.hbm [shape: f32[1,1], index: 2, kind: output, shape index: {}]  }
   0x1   :  { %8 = vsyncpa [#allocation4], 0  ;;  %s134_s9 = smov [#allocation2]   ;;  %s86_s13 = scalar_lea.hbm %s179_s0, 32 }
   0x2   :  { %s15_s10 = sshll.u32 %s134_s9, 4  ;;  %p87_p0 = scmp.ne.s32.totalorder %s179_s0, %s86_s13  ;;  %s16_s10 = int_to_ptr.vmem [resolvable:$true] %s15_s10 }
   0x3   :  { %p90_p1 = scmp.lt.u32.totalorder %s86_s13, %s179_s0 }
   0x5   :  { %p92_p2 = pnand %p90_p1, %p87_p0 }
   0x7   :  { %95 = shalt.err (!%p92_p2)
}
   0x8   :  { %s96_s18 = scalar_lea.vmem %s16_s10, 32  ;;  %p101_p4 = scmp.lt.s32.totalorder %s16_s10, %s16_s10 }
   0x9   :  { %p97_p3 = scmp.ne.s32.totalorder %s16_s10, %s96_s18  ;;  %p102_p5 = scmp.lt.s32.totalorder %s96_s18, %s96_s18 }
   0xb   :  { %p103_p6 = por %p102_p5, %p101_p4 }
   0xd   :  { %p104_p7 = pnand %p103_p6, %p97_p3 }
   0xf   :  { %107 = shalt.err (!%p104_p7)
}
  0x10   :  { %18 = dma.hbm_to_vmem [thread:$0]  %s179_s0, 32, %s16_s10, [#allocation3]  }
  0x11   :  { %130 = dma.done.wait [#allocation3], 32  }
  0x12   :  { %131 = vsyncadd [#allocation3], 4294967264  ;;  %v26_v0 = vlaneseq  ;;  %v135_v2 = vmov 0.0   ;;  %v24_v5 = vld [vmem:[#allocation2] sm:$0x1]  ;;  %vm58_vm9 = vcmask 65536  }
  0x13   :  { %82 = vlog2.f32 %v24_v5  ;;  %v49_v7 = vsub.f32 1.0, %v24_v5  ;;  %v25_v12 = vld [vmem:[%s180_s1] sm:$0x1]  ;;  %s136_s22 = smov [#allocation5]   ;;  %vm62_vm10 = vcmask 0  }
  0x14   :  { %v27_v1 = vand.u32 127, %v26_v0  ;;  %v54_v18 = vsub.f32 1.0, %v25_v12  ;;  %s70_s1 = sshll.u32 %s136_s22, 4  ;;  %s71_s1 = int_to_ptr.vmem [resolvable:$true] %s70_s1 }
  0x15   :  { %84 = vlog2.f32 %v49_v7  ;;  %s108_s23 = scalar_lea.vmem %s71_s1, 16  ;;  %s112_s24 = scalar_lea.vmem %s71_s1, 32 }
  0x16   :  { %vm28_vm0 = vcmp.eq.s32.totalorder %v27_v1, 0  ;;  %vm30_vm1 = vcmp.eq.s32.totalorder %v27_v1, 1  ;;  %vm32_vm2 = vcmp.eq.s32.totalorder %v27_v1, 2  ;;  %vm34_vm3 = vcmp.eq.s32.totalorder %v27_v1, 3  ;;  %p109_p8 = scmp.ne.s32.totalorder %s71_s1, %s108_s23  ;;  %p113_p9 = scmp.lt.s32.totalorder %s71_s1, %s71_s1 }
  0x17   :  { %v29_v3 = vsel %vm28_vm0, -0.073619634, %v135_v2  ;;  %vm36_vm4 = vcmp.eq.s32.totalorder %v27_v1, 4  ;;  %vm38_vm5 = vcmp.eq.s32.totalorder %v27_v1, 5  ;;  %vm40_vm6 = vcmp.eq.s32.totalorder %v27_v1, 6  ;;  %p114_p10 = scmp.lt.s32.totalorder %s112_s24, %s108_s23 }
  0x18   :  { %v31_v4 = vsel %vm30_vm1, -0.23466258, %v29_v3  ;;  %vm42_vm7 = vcmp.eq.s32.totalorder %v27_v1, 7  ;;  %vm44_vm8 = vcmp.eq.s32.totalorder %v27_v1, 8 }
  0x19   :  { %v33_v6 = vsel %vm32_vm2, -0.07822086, %v31_v4  ;;  %p115_p11 = por %p114_p10, %p113_p9 }
  0x1a   :  { %v35_v8 = vsel %vm34_vm3, -0.06257669, %v33_v6 }
  0x1b   :  { %v37_v9 = vsel %vm36_vm4, -0.10429448, %v35_v8  ;;  %p116_p12 = pnand %p115_p11, %p109_p8 }
  0x1c   :  { %v39_v10 = vsel %vm38_vm5, -0.06257669, %v37_v9 }
  0x1d   :  { %v83_v11 = vpop.eup %82  ;;  %v41_v15 = vsel %vm40_vm6, -0.10429448, %v39_v10 }
  0x1e   :  { %v47_v13 = vmul.f32 0.6931472, %v83_v11  ;;  %v43_v19 = vsel %vm42_vm7, -0.18773006, %v41_v15 }
  0x1f   :  { %v85_v14 = vpop.eup %84  ;;  %v45_v23 = vsel %vm44_vm8, -0.09202454, %v43_v19 }
  0x20   :  { %v48_v16 = vmax.f32 %v47_v13, -100.0  ;;  %v51_v17 = vmul.f32 0.6931472, %v85_v14 }
  0x22   :  { %v52_v20 = vmax.f32 %v51_v17, -100.0  ;;  %v53_v21 = vmul.f32 %v48_v16, %v25_v12 }
  0x24   :  { %v55_v22 = vmul.f32 %v54_v18, %v52_v20 }
  0x26   :  { %v56_v24 = vadd.f32 %v55_v22, %v53_v21 }
  0x28   :  { %v57_v25 = vmul.f32 %v56_v24, %v45_v23 }
  0x2a   :  { %v59_v26 = vsel %vm58_vm9, %v57_v25, 0.0 }
  0x2b   :  { %60 = vadd.xlane.f32.xlu0 %v59_v26 }
  0xb8   :  { %v61_v27 = vpop.xlane.xlu0 %60 }
  0xb9   :  { %63 = vst.msk [vmem:[#allocation5] sm:$0x1] %vm62_vm10, %v61_v27 }
  0xba   :  { %119 = shalt.err (!%p116_p12)
}
  0xbb   :  { %s120_s27 = scalar_lea.hbm %s181_s2, 16 }
  0xbc   :  { %p121_p13 = scmp.ne.s32.totalorder %s181_s2, %s120_s27  ;;  %p124_p0 = scmp.lt.u32.totalorder %s120_s27, %s181_s2 }
  0xbe   :  { %p126_p1 = pnand %p124_p0, %p121_p13 }
  0xc0   :  { %129 = shalt.err (!%p126_p1)
}
  0xc1   :  { %73 = dma.vmem_to_hbm [thread:$0]  %s71_s1, 16, %s181_s2, [#allocation4]  }
  0xc2   :  { %132 = dma.done.wait [#allocation4], 16  }
  0xc3   :  { %133 = vsyncadd [#allocation4], 4294967280 }
  0xc4   :  { %77 = vsyncpa [#allocation3], 1 }
  0xc5   :  { %78 = vsyncpa [#allocation4], 1 }

</bundles_post_ra>
